<compile_context>
chip_gen: v5e
topology: v5e:2x2
jax: 0.10.0
libtpu: 0.0.40
codegen_flags: <defaults>
</compile_context>

<pallas_src>
import jax
import jax.numpy as jnp
from jax.experimental import pallas as pl
from jax.experimental.pallas import tpu as pltpu


_SUBLANE = 8  # second-to-last block dim must be a multiple of 8 (or == array dim)


def _affine_kernel(x_ref, w_ref, b_ref, o_ref):
    """o = x @ W_eff + b_eff for one batch tile.

    x_ref: (TILE_M, K) f32   -- one batch tile (pipelined); cast to bf16 in-kernel
    w_ref: (K, N)      bf16  -- VMEM-resident across all grid steps
    b_ref: (1, N)      f32   -- VMEM-resident
    o_ref: (TILE_M, N) bf16 (or f32)
    """
    x = x_ref[...].astype(w_ref.dtype)                     # VPU cast, no HBM cost
    acc = jnp.dot(x, w_ref[...], preferred_element_type=jnp.float32)
    o_ref[...] = (acc + b_ref[...]).astype(o_ref.dtype)


def prepare_dnn(params, compute_dtype=jnp.bfloat16):
    """One-time (hoisted) pre-composition of the activation-free Linear chain.

    Returns (W_eff[in, out] in compute_dtype, b_eff[1, out] in f32).
    """
    w_eff, b_eff = params[0]
    w_eff = w_eff.astype(jnp.float32)
    b_eff = b_eff.astype(jnp.float32)
    for (w, b) in params[1:]:
        w32 = w.astype(jnp.float32)
        b_eff = b_eff @ w32 + b.astype(jnp.float32)
        w_eff = w_eff @ w32
    return w_eff.astype(compute_dtype), b_eff


def dnn_forward(x, w_eff, b_eff, *, tile_m=512, out_dtype=jnp.bfloat16):
    """Single-pallas_call DNN forward.

    x:     (batch, in_dim) f32 (unpadded, fed directly to the kernel)
    w_eff: (in_dim, out_dim) compute dtype (from prepare_dnn)
    b_eff: (1, out_dim) f32 (from prepare_dnn)
    """
    batch, in_dim = x.shape
    k_dim, out_dim = w_eff.shape
    assert k_dim == in_dim, (k_dim, in_dim)
    assert b_eff.shape == (1, out_dim), b_eff.shape

    # --- batch tiling -------------------------------------------------------
    if batch <= tile_m:
        # Single tile: block == full array extent (8-sublane rule waived).
        tile_m = batch
    else:
        # Multi-tile: keep the sublane rule satisfied.
        tile_m = max(_SUBLANE, (tile_m // _SUBLANE) * _SUBLANE)
    num_tiles = pl.cdiv(batch, tile_m)

    # v7x has 2 TensorCores: prefer an even number of batch tiles so both get
    # work under dimension_semantics=("parallel",).  No effect on v5e/v6e.
    if (num_tiles > 1 and num_tiles % 2 == 1
            and tile_m >= 2 * _SUBLANE and (tile_m // 2) % _SUBLANE == 0):
        tile_m //= 2
        num_tiles = pl.cdiv(batch, tile_m)

    # --- VMEM budget guard (resident W/b + double-buffered x/out tiles) ------
    def _isz(dt):
        return jnp.dtype(dt).itemsize

    resident = w_eff.size * _isz(w_eff.dtype) + b_eff.size * _isz(b_eff.dtype)
    pipelined = 2 * tile_m * (in_dim * _isz(x.dtype) + out_dim * _isz(out_dtype))
    compiler_kwargs = dict(dimension_semantics=("parallel",))
    if resident + pipelined > (24 << 20):
        # Raise the scoped-VMEM limit (v5e default 16 MiB, v6e/v7x 32 MiB).
        compiler_kwargs["vmem_limit_bytes"] = min(
            resident + pipelined + (8 << 20), 60 << 20)
        # TODO(synk): if W_eff alone ever outgrows v7x's 64 MiB VMEM, add a
        # second ("parallel") grid axis over N with W spec (k, tile_n).

    out = pl.pallas_call(
        _affine_kernel,
        out_shape=jax.ShapeDtypeStruct((batch, out_dim), out_dtype),
        grid=(num_tiles,),
        in_specs=[
            pl.BlockSpec((tile_m, in_dim), lambda i: (i, 0)),   # x: tiled over batch
            pl.BlockSpec((in_dim, out_dim), lambda i: (0, 0)),  # W_eff: VMEM-resident
            pl.BlockSpec((1, out_dim), lambda i: (0, 0)),       # b_eff: VMEM-resident
        ],
        out_specs=pl.BlockSpec((tile_m, out_dim), lambda i: (i, 0)),
        compiler_params=pltpu.CompilerParams(**compiler_kwargs),
    )(x, w_eff, b_eff)
    return out


def build_dnn_params(key, input_size, layer_list):
    """Replicates DNN.__init__'s layer construction exactly (incl. the early break).

    Returns a list of (W, b) with W: (in_features, out_features), initialized
    like torch.nn.Linear (uniform in +-1/sqrt(fan_in)).
    """
    full_list = list(layer_list) + [2]
    dims = [(input_size, full_list[0])]
    for i, _layer in enumerate(layer_list):
        dims.append((layer_list[i], full_list[i + 1]))
        if i == len(layer_list) - 2:
            break

    params = []
    for (fan_in, fan_out) in dims:
        key, kw, kb = jax.random.split(key, 3)
        bound = 1.0 / jnp.sqrt(jnp.float32(fan_in))
        w = jax.random.uniform(kw, (fan_in, fan_out), jnp.float32,
                               minval=-bound, maxval=bound)
        b = jax.random.uniform(kb, (1, fan_out), jnp.float32,
                               minval=-bound, maxval=bound)
        params.append((w, b))
    return params


def dnn_reference(x, params):
    """Exact f32 layer-by-layer reference (PyTorch forward semantics)."""
    h = x
    for (w, b) in params:
        h = h @ w + b
    return h


if __name__ == "__main__":
    # Small shapes consistent with the module: batch=4, input_size=32,
    # layer_list=[64, 32]  ->  Linear(32, 64), Linear(64, 32)
    input_size = 32
    layer_list = [64, 32]
    batch_size = 4

    key = jax.random.PRNGKey(0)
    key, kx = jax.random.split(key)
    x = jax.random.normal(kx, (batch_size, input_size), jnp.float32)

    params = build_dnn_params(key, input_size, layer_list)

    # One-time weight composition / cast (hoisted out of the per-call path).
    w_eff, b_eff = prepare_dnn(params)

    out = dnn_forward(x, w_eff, b_eff)
    out = jax.block_until_ready(out)

    ref = dnn_reference(x, params)
    assert out.shape == ref.shape, (out.shape, ref.shape)
    # Tolerance covers bf16 weights/inputs/outputs (f32 accumulation) and the
    # reassociated (pre-composed) weight product; typical error here is O(1e-3).
    assert jnp.allclose(out.astype(jnp.float32), ref, atol=2e-2, rtol=2e-2), \
        "mismatch vs reference"

    print("KERNEL_OK")
</pallas_src>

<mosaic_0001>
module attributes {stable_mosaic.version = 11 : i64} {
  func.func @_affine_kernel(%arg0: i32, %arg1: memref<4x32xf32, #tpu.memory_space<vmem>>, %arg2: memref<32x32xbf16, #tpu.memory_space<vmem>>, %arg3: memref<1x32xf32, #tpu.memory_space<vmem>>, %arg4: memref<4x32xbf16, #tpu.memory_space<vmem>>) attributes {dimension_semantics = [#tpu.dimension_semantics<parallel>], iteration_bounds = array<i64: 1>, scalar_prefetch = 0 : i64, scratch_operands = 0 : i64, tpu.core_type = #tpu.core_type<tc>, window_params = [{transform_indices = @transform_0, window_bounds = array<i64: 4, 32>}, {pipeline_mode = #tpu.pipeline_mode<synchronous>, transform_indices = @transform_1, window_bounds = array<i64: 32, 32>}, {pipeline_mode = #tpu.pipeline_mode<synchronous>, transform_indices = @transform_2, window_bounds = array<i64: 1, 32>}, {transform_indices = @transform_3, window_bounds = array<i64: 4, 32>}]} {
    %c0 = arith.constant 0 : index
    %c0_0 = arith.constant 0 : index
    %0 = vector.load %arg1[%c0, %c0_0] : memref<4x32xf32, #tpu.memory_space<vmem>>, vector<4x32xf32>
    %1 = arith.truncf %0 : vector<4x32xf32> to vector<4x32xbf16>
    %c0_1 = arith.constant 0 : index
    %c0_2 = arith.constant 0 : index
    %2 = vector.load %arg2[%c0_1, %c0_2] : memref<32x32xbf16, #tpu.memory_space<vmem>>, vector<32x32xbf16>
    %cst = arith.constant dense<0.000000e+00> : vector<4x32xf32>
    %3 = tpu.matmul %1, %2, %cst {dimension_numbers = #tpu.dot_dimension_numbers<[1], [0], [0], [1], [0, 0, 1, 1], [], []>} : vector<4x32xbf16>, vector<32x32xbf16>, vector<4x32xf32> -> vector<4x32xf32>
    %c0_3 = arith.constant 0 : index
    %c0_4 = arith.constant 0 : index
    %4 = vector.load %arg3[%c0_3, %c0_4] : memref<1x32xf32, #tpu.memory_space<vmem>>, vector<1x32xf32>
    %5 = vector.broadcast %4 : vector<1x32xf32> to vector<4x32xf32>
    %6 = arith.addf %3, %5 : vector<4x32xf32>
    %7 = arith.truncf %6 : vector<4x32xf32> to vector<4x32xbf16>
    %c0_5 = arith.constant 0 : index
    %c0_6 = arith.constant 0 : index
    %8 = vector.load %arg4[%c0_5, %c0_6] : memref<4x32xbf16, #tpu.memory_space<vmem>>, vector<4x32xbf16>
    tpu.vector_store %arg4[%c0_5, %c0_6], %7 {strides = array<i32>} : memref<4x32xbf16, #tpu.memory_space<vmem>>, vector<4x32xbf16>,
    return
  }
  func.func @transform_0(%arg0: i32) -> (i32, i32) {
    %c0_i32 = arith.constant 0 : i32
    %c0_i32_0 = arith.constant 0 : i32
    return %arg0, %c0_i32 : i32, i32
  }
  func.func @transform_1(%arg0: i32) -> (i32, i32) {
    %c0_i32 = arith.constant 0 : i32
    %c0_i32_0 = arith.constant 0 : i32
    %c0_i32_1 = arith.constant 0 : i32
    return %c0_i32, %c0_i32_0 : i32, i32
  }
  func.func @transform_2(%arg0: i32) -> (i32, i32) {
    %c0_i32 = arith.constant 0 : i32
    %c0_i32_0 = arith.constant 0 : i32
    %c0_i32_1 = arith.constant 0 : i32
    return %c0_i32, %c0_i32_0 : i32, i32
  }
  func.func @transform_3(%arg0: i32) -> (i32, i32) {
    %c0_i32 = arith.constant 0 : i32
    %c0_i32_0 = arith.constant 0 : i32
    return %arg0, %c0_i32 : i32, i32
  }
}

</mosaic_0001>

<bundles_post_ra>
// kernel: tpu_custom_call.1
= control target key start
LH: loop header
LB: loop body
LE: loop exit
PB: predicated region body
PF: predicated region fallthrough
CT: control target
= control target key end

     0   :  { %8 = vsyncpa [#allocation3], 0  ;;  %s238_s0 = inlined_call_operand.hbm [shape: f32[4,32], index: 0, kind: input, shape index: {}]   ;;  %s239_s1 = inlined_call_operand.hbm [shape: bf16[32,32], index: 1, kind: input, shape index: {}]   ;;  %s240_s2 = inlined_call_operand.vmem [shape: f32[1,32], index: 2, kind: input, shape index: {}]   ;;  %s241_s3 = inlined_call_operand.hbm [shape: bf16[4,32], index: 3, kind: output, shape index: {}]  }
   0x1   :  { %9 = vsyncpa [#allocation6], 0 }
   0x2   :  { %10 = vsyncpa [#allocation4], 0  ;;  %s16_s14 = sshll.u32 %s238_s0, 4  ;;  %s201_s15 = smov [#allocation2]   ;;  %s17_s14 = int_to_ptr.hbm [resolvable:$true] %s16_s14 }
   0x3   :  { %s18_s16 = sshll.u32 %s201_s15, 4  ;;  %s26_s19 = sshll.u32 %s239_s1, 4  ;;  %s19_s16 = int_to_ptr.vmem [resolvable:$true] %s18_s16  ;;  %s27_s19 = int_to_ptr.hbm [resolvable:$true] %s26_s19 }
   0x4   :  { %21 = dma.hbm_to_vmem [thread:$0]  %s17_s14, 64, %s19_s16, [#allocation3]  }
   0x5   :  { %s202_s20 = smov [#allocation5]   ;;  %s203_s22 = smov 64  }
   0x6   :  { %s28_s21 = sshll.u32 %s202_s20, 4  ;;  %s204_s23 = smov 4   ;;  %s29_s21 = int_to_ptr.vmem [resolvable:$true] %s28_s21 }
   0x7   :  { %34 = dma.hbm_to_vmem [thread:$0]  %s27_s19, 256, %s29_s21, [#allocation6], %s203_s22, %s203_s22, %s204_s23  }
   0x8   :  { %195 = dma.done.wait [#allocation3], 64  }
   0x9   :  { %196 = vsyncadd [#allocation3], 4294967232 }
   0xa   :  { %197 = dma.done.wait [#allocation6], 256  }
   0xb   :  { %198 = vsyncadd [#allocation6], 4294967040  ;;  %v116_v0 = vld [vmem:[#allocation5 + $0x8] sm:$0xff]  ;;  %v115_v1 = vld [vmem:[#allocation5] sm:$0xff]  ;;  %vm68_vm0 = vcmask 261120   ;;  %s205_s24 = smov [#allocation7]  }
   0xc   :  { %78 = vmatpush.bf16.msra.mxu0 %v116_v0  ;;  %v46_v2 = vld [vmem:[#allocation2] sm:$0xf]  ;;  %s93_s25 = sshll.u32 %s205_s24, 4  ;;  %s95_s28 = sshll.u32 %s241_s3, 4  ;;  %vm86_vm1 = vcmask 254976   ;;  %s94_s25 = int_to_ptr.vmem [resolvable:$true] %s93_s25  ;;  %s96_s28 = int_to_ptr.hbm [resolvable:$true] %s95_s28 }
   0xd   :  { %v47_v3 = vpack.c.bf16 %v46_v2, %v46_v2  ;;  %v122_v4 = vld [vmem:[%s240_s2] ss:$0 sm:$0xff] }
  0x10   :  { %79 = vmatpush.bf16.msra.mxu0 %v115_v1 }
  0x13   :  { %114 = vmatmul.msk.bf16.vlgmr.msra.gmra.mxu0 %vm68_vm0, %v47_v3 }
  0x90   :  { %v81_v5 = vpop.f32.mrf.mxu0 }
  0x91   :  { %v82_v6 = vadd.f32 %v122_v4, %v81_v5 }
  0x93   :  { %v85_v7 = vpack.c.bf16 %v82_v6, %v82_v6 }
  0x95   :  { %87 = vst.msk [vmem:[#allocation7] sm:$0x3] %vm86_vm1, %v85_v7 }
  0x96   :  { %98 = dma.vmem_to_hbm [thread:$0]  %s94_s25, 32, %s96_s28, [#allocation4]  }
  0x98   :  { %v83_v8 = vpop.f32.mrf.mxu0 }
  0x99   :  { %199 = dma.done.wait [#allocation4], 32  }
  0x9a   :  { %200 = vsyncadd [#allocation4], 4294967264 }
  0x9b   :  { %103 = vsyncpa [#allocation3], 1 }
  0x9c   :  { %104 = vsyncpa [#allocation6], 1 }
  0x9d   :  { %105 = vsyncpa [#allocation4], 1 }

</bundles_post_ra>
